<compile_context>
chip_gen: v7x
topology: tpu7x:2x2x1
jax: 0.10.0
libtpu: 0.0.40
codegen_flags: <defaults>
</compile_context>

<pallas_src>
import functools

import jax
import jax.numpy as jnp
from jax.experimental import pallas as pl
from jax.experimental.pallas import tpu as pltpu

# Hyper-parameters from AsymmetricLoss.__init__ (deterministic, no checkpoint).
GAMMA_NEG = 2.0
GAMMA_POS = 1.0
CLIP = 0.05
EPS = 1e-8

_DEFAULT_BLOCK_BYTES = 2 * 1024 * 1024     # per-input block (largest dtype)
_DEFAULT_MAX_LANES = 2048                  # cap on the column tile width
_DEFAULT_VMEM_LIMIT = 48 * 1024 * 1024     # explicit scoped-VMEM limit


def _cdiv(a, b):
    return -(-a // b)


def _round_up(x, m):
    return _cdiv(x, m) * m


def _tensorcores_per_chip():
    """Best-effort TC-per-chip count (2 on v7x); falls back to 1."""
    try:
        info = pltpu.get_tpu_info()
    except Exception:
        return 1
    for name in ("num_tensorcores", "tensorcores_per_chip", "num_cores",
                 "cores_per_chip", "core_count"):
        v = getattr(info, name, None)
        if isinstance(v, int) and 1 <= v <= 8:
            return v
    return 1


def _static_pow(x, g):
    """x ** g for a compile-time scalar g; small integer g uses VPU multiplies only."""
    gf = float(g)
    if gf == int(gf) and 0 <= int(gf) <= 4:
        n = int(gf)
        if n == 0:
            return jnp.ones_like(x)
        y = x
        for _ in range(n - 1):
            y = y * x
        return y
    return jnp.power(x, jnp.float32(gf))


def _asl_kernel(lp_ref, ln_ref, t_ref, out_ref, *,
                g_neg, g_pos, clip, eps, binary_targets, use_approx_recip,
                inner_i, n_row_blocks, bm, bn, rows_total, cols_total,
                need_row_mask, need_col_mask, has_phantom):
    s = pl.program_id(0)
    i = pl.program_id(1)
    j = pl.program_id(2)

    @pl.when((i == 0) & (j == 0))
    def _init():
        out_ref[...] = jnp.zeros_like(out_ref)

    row_block = s * inner_i + i

    def _sigmoid(x):
        if use_approx_recip:
            # EUP relief on v7x: approximate reciprocal frees the exact divide.
            return pl.reciprocal(1.0 + jnp.exp(-x), approx=True)
        return jax.nn.sigmoid(x)

    def _accumulate():
        lp = lp_ref[...]
        ln = ln_ref[...]
        t = t_ref[...]

        if binary_targets:
            # t in {0,1}: select the active logit on the raw (possibly bf16)
            # blocks, cast once -> one sigmoid + one log per element, integer
            # powers instead of pow = exp(g*log(.)).  No f32 target temporary.
            pos = t != 0
            x = jnp.where(pos, lp, ln).astype(jnp.float32)
            p = _sigmoid(x)
            if clip > 0:
                p = jnp.where(pos, p, jnp.minimum(p + clip, 1.0))
            loss = jnp.log(jnp.maximum(p, eps))
            om = 1.0 - p
            loss = loss * jnp.where(pos, _static_pow(om, g_pos),
                                    _static_pow(om, g_neg))
        else:
            # General soft-label path (mirrors the PyTorch module verbatim).
            lpf = lp.astype(jnp.float32)
            lnf = ln.astype(jnp.float32)
            tf = t.astype(jnp.float32)
            p_pos = _sigmoid(lpf)
            p_neg = _sigmoid(lnf)
            if clip > 0:
                p_neg = jnp.minimum(p_neg + clip, 1.0)
            loss = (tf * jnp.log(jnp.maximum(p_pos, eps))
                    + (1.0 - tf) * jnp.log(jnp.maximum(p_neg, eps)))
            pt = p_pos * tf + p_neg * (1.0 - tf)
            gamma = g_pos * tf + g_neg * (1.0 - tf)
            loss = loss * jnp.power(1.0 - pt, gamma)

        # Mask only compiled in when the block grid overhangs the true (B, N).
        mask = None
        if need_row_mask:
            rows = (jax.lax.broadcasted_iota(jnp.int32, (bm, bn), 0)
                    + row_block * bm)
            mask = rows < rows_total
        if need_col_mask:
            cols = (jax.lax.broadcasted_iota(jnp.int32, (bm, bn), 1)
                    + j * bn)
            cmask = cols < cols_total
            mask = cmask if mask is None else (mask & cmask)
        if mask is not None:
            loss = jnp.where(mask, loss, 0.0)

        # VPU-only accumulation into the resident per-split block.
        out_ref[...] += loss

    if has_phantom:
        pl.when(row_block < n_row_blocks)(_accumulate)
    else:
        _accumulate()


def asymmetric_loss(logit_pos, logit_neg, target, *,
                    gamma_neg=GAMMA_NEG, gamma_pos=GAMMA_POS,
                    clip=CLIP, eps=EPS,
                    assume_binary_targets=False,
                    use_approx_recip=False,
                    num_splits=None,
                    core_parallel=False,
                    max_lanes=_DEFAULT_MAX_LANES,
                    target_block_bytes=_DEFAULT_BLOCK_BYTES,
                    vmem_limit_bytes=_DEFAULT_VMEM_LIMIT):
    """ASL forward. logit_pos/logit_neg/target: [B, N]. Returns scalar f32.

    assume_binary_targets=False (default) reproduces the module math exactly
    (soft labels allowed); True exploits t in {0,1} for a cheaper fused path.
    Inputs may be bf16 / int8 / bool; the kernel computes in f32.  No
    wrapper-side copies are made: the kernel streams the [B, N] arrays as-is.
    """
    assert logit_pos.shape == logit_neg.shape == target.shape
    assert logit_pos.ndim == 2, "AsymmetricLoss expects [B, N] inputs"
    B, N = logit_pos.shape
    total = B * N
    assert total > 0

    max_itemsize = max(jnp.dtype(a.dtype).itemsize
                       for a in (logit_pos, logit_neg, target))
    min_itemsize = min(jnp.dtype(a.dtype).itemsize
                       for a in (logit_pos, logit_neg, target))
    # Sublane quantum: keep packed dtypes on friendly row multiples.
    sub_q = 8 if min_itemsize >= 4 else (16 if min_itemsize >= 2 else 32)

    # Column tile: full width when it fits, else a 128-multiple (ragged last
    # column block handled by DMA-partial + in-kernel mask).
    max_lanes = max(128, (int(max_lanes) // 128) * 128)
    bn = N if N <= max_lanes else max_lanes
    n_col_blocks = _cdiv(N, bn)
    need_col_mask = n_col_blocks * bn > N

    # Row tile sized from the actual per-element byte width of the inputs.
    bm_budget = max(1, int(target_block_bytes) // (bn * max_itemsize))
    bm = max(sub_q, (bm_budget // sub_q) * sub_q)
    bm = min(bm, _round_up(B, sub_q))
    n_row_blocks = _cdiv(B, bm)
    need_row_mask = n_row_blocks * bm > B

    # Core split (real 2-TC split on v7x via core_parallel=True).
    if num_splits is None:
        num_splits = _tensorcores_per_chip()
    num_splits = max(1, min(int(num_splits), n_row_blocks))
    inner_i = _cdiv(n_row_blocks, num_splits)
    has_phantom = num_splits * inner_i > n_row_blocks

    kernel = functools.partial(
        _asl_kernel,
        g_neg=float(gamma_neg), g_pos=float(gamma_pos),
        clip=float(clip), eps=float(eps),
        binary_targets=bool(assume_binary_targets),
        use_approx_recip=bool(use_approx_recip),
        inner_i=inner_i, n_row_blocks=n_row_blocks,
        bm=bm, bn=bn, rows_total=B, cols_total=N,
        need_row_mask=need_row_mask, need_col_mask=need_col_mask,
        has_phantom=has_phantom)

    if has_phantom:
        def in_index_map(s, i, j):
            rb = jnp.minimum(s * inner_i + i, n_row_blocks - 1)
            return (rb, j)
    else:
        def in_index_map(s, i, j):
            return (s * inner_i + i, j)

    in_spec = pl.BlockSpec((bm, bn), in_index_map)
    out_spec = pl.BlockSpec((None, bm, bn), lambda s, i, j: (s, 0, 0))

    split_sem = pltpu.CORE_PARALLEL if core_parallel else "parallel"

    partials = pl.pallas_call(
        kernel,
        out_shape=jax.ShapeDtypeStruct((num_splits, bm, bn), jnp.float32),
        grid_spec=pltpu.PrefetchScalarGridSpec(
            num_scalar_prefetch=0,
            grid=(num_splits, inner_i, n_col_blocks),
            in_specs=[in_spec, in_spec, in_spec],
            out_specs=out_spec,
        ),
        compiler_params=pltpu.CompilerParams(
            dimension_semantics=(split_sem, "arbitrary", "arbitrary"),
            vmem_limit_bytes=int(vmem_limit_bytes)),
    )(logit_pos, logit_neg, target)

    # Tiny (num_splits, bm, bn) reduction + mean scaling in plain JAX.
    return -(jnp.sum(partials) / float(total))


def asymmetric_loss_ref(logit_pos, logit_neg, target):
    """Pure-JAX reference mirroring the PyTorch module."""
    logit_pos = logit_pos.astype(jnp.float32)
    logit_neg = logit_neg.astype(jnp.float32)
    target = target.astype(jnp.float32)
    p_pos = jax.nn.sigmoid(logit_pos)
    p_neg = jax.nn.sigmoid(logit_neg)
    if CLIP > 0:
        p_neg = jnp.minimum(p_neg + CLIP, 1.0)
    loss_pos = target * jnp.log(jnp.maximum(p_pos, EPS))
    loss_neg = (1.0 - target) * jnp.log(jnp.maximum(p_neg, EPS))
    loss = loss_pos + loss_neg
    pt = p_pos * target + p_neg * (1.0 - target)
    gamma = GAMMA_POS * target + GAMMA_NEG * (1.0 - target)
    loss = loss * jnp.power(1.0 - pt, gamma)
    return -jnp.mean(loss)


if __name__ == "__main__":
    key = jax.random.PRNGKey(0)
    k1, k2, k3, k4, k5, k6 = jax.random.split(key, 6)

    # Case 1: small f32 [B, N]; N deliberately not a multiple of 128.
    B, N = 16, 100
    logit_pos = jax.random.normal(k1, (B, N), dtype=jnp.float32)
    logit_neg = jax.random.normal(k2, (B, N), dtype=jnp.float32)
    target = jax.random.bernoulli(k3, p=0.3, shape=(B, N)).astype(jnp.float32)

    ref = asymmetric_loss_ref(logit_pos, logit_neg, target)

    out = jax.block_until_ready(asymmetric_loss(logit_pos, logit_neg, target))
    assert jnp.allclose(out, ref, rtol=2e-5, atol=2e-6), (out, ref)

    out_bin = jax.block_until_ready(
        asymmetric_loss(logit_pos, logit_neg, target,
                        assume_binary_targets=True))
    assert jnp.allclose(out_bin, ref, rtol=2e-5, atol=2e-6), (out_bin, ref)

    # Case 2: narrow-dtype streaming (bf16 logits, int8 targets), multi-block
    # grid with a ragged last column tile, and a 2-way row-block split.
    B2, N2 = 64, 1000
    lp2 = jax.random.normal(k4, (B2, N2), dtype=jnp.float32).astype(jnp.bfloat16)
    ln2 = jax.random.normal(k5, (B2, N2), dtype=jnp.float32).astype(jnp.bfloat16)
    t2 = jax.random.bernoulli(k6, p=0.3, shape=(B2, N2)).astype(jnp.int8)

    ref2 = asymmetric_loss_ref(lp2, ln2, t2)

    out2 = jax.block_until_ready(
        asymmetric_loss(lp2, ln2, t2, assume_binary_targets=True,
                        num_splits=2, max_lanes=512,
                        target_block_bytes=32 * 1024))
    assert jnp.allclose(out2, ref2, rtol=1e-4, atol=1e-5), (out2, ref2)

    out2_general = jax.block_until_ready(
        asymmetric_loss(lp2, ln2, t2,
                        num_splits=2, max_lanes=512,
                        target_block_bytes=32 * 1024))
    assert jnp.allclose(out2_general, ref2, rtol=1e-4, atol=1e-5), (out2_general, ref2)

    print("KERNEL_OK")
</pallas_src>

<mosaic_0001>
module attributes {stable_mosaic.version = 11 : i64} {
  func.func @_asl_kernel(%arg0: i32, %arg1: i32, %arg2: i32, %arg3: memref<16x100xf32, #tpu.memory_space<vmem>>, %arg4: memref<16x100xf32, #tpu.memory_space<vmem>>, %arg5: memref<16x100xf32, #tpu.memory_space<vmem>>, %arg6: memref<1x16x100xf32, #tpu.memory_space<vmem>>) attributes {dimension_semantics = [#tpu.dimension_semantics<parallel>, #tpu.dimension_semantics<arbitrary>, #tpu.dimension_semantics<arbitrary>], iteration_bounds = array<i64: 1, 1, 1>, scalar_prefetch = 0 : i64, scratch_operands = 0 : i64, tpu.core_type = #tpu.core_type<tc>, window_params = [{transform_indices = @transform_0, window_bounds = array<i64: 16, 100>}, {transform_indices = @transform_1, window_bounds = array<i64: 16, 100>}, {transform_indices = @transform_2, window_bounds = array<i64: 16, 100>}, {transform_indices = @transform_3, window_bounds = array<i64: 1, 16, 100>}]} {
    %c0_i32 = arith.constant 0 : i32
    %0 = arith.cmpi eq, %arg1, %c0_i32 : i32
    %c0_i32_0 = arith.constant 0 : i32
    %1 = arith.cmpi eq, %arg2, %c0_i32_0 : i32
    %2 = arith.andi %0, %1 : i1
    %3 = arith.extui %2 : i1 to i32
    %c0_i32_1 = arith.constant 0 : i32
    %4 = arith.cmpi ne, %3, %c0_i32_1 : i32
    scf.if %4 {
      %cst_24 = arith.constant 0.000000e+00 : f32
      %55 = vector.broadcast %cst_24 : f32 to vector<16x100xf32>
      %c0_25 = arith.constant 0 : index
      %c0_26 = arith.constant 0 : index
      %c0_27 = arith.constant 0 : index
      %56 = vector.load %arg6[%c0_25, %c0_26, %c0_27] : memref<1x16x100xf32, #tpu.memory_space<vmem>>, vector<1x16x100xf32>
      %57 = vector.shape_cast %56 : vector<1x16x100xf32> to vector<16x100xf32>
      %58 = vector.shape_cast %55 : vector<16x100xf32> to vector<1x16x100xf32>
      tpu.vector_store %arg6[%c0_25, %c0_26, %c0_27], %58 {strides = array<i32>} : memref<1x16x100xf32, #tpu.memory_space<vmem>>, vector<1x16x100xf32>,
    } else {
    }
    %c0 = arith.constant 0 : index
    %c0_2 = arith.constant 0 : index
    %5 = vector.load %arg3[%c0, %c0_2] : memref<16x100xf32, #tpu.memory_space<vmem>>, vector<16x100xf32>
    %c0_3 = arith.constant 0 : index
    %c0_4 = arith.constant 0 : index
    %6 = vector.load %arg4[%c0_3, %c0_4] : memref<16x100xf32, #tpu.memory_space<vmem>>, vector<16x100xf32>
    %c0_5 = arith.constant 0 : index
    %c0_6 = arith.constant 0 : index
    %7 = vector.load %arg5[%c0_5, %c0_6] : memref<16x100xf32, #tpu.memory_space<vmem>>, vector<16x100xf32>
    %8 = arith.negf %5 : vector<16x100xf32>
    %9 = math.exp %8 : vector<16x100xf32>
    %cst = arith.constant 1.000000e+00 : f32
    %10 = vector.broadcast %cst : f32 to vector<16x100xf32>
    %11 = arith.addf %10, %9 : vector<16x100xf32>
    %12 = arith.divf %10, %11 : vector<16x100xf32>
    %13 = arith.negf %6 : vector<16x100xf32>
    %14 = math.exp %13 : vector<16x100xf32>
    %cst_7 = arith.constant 1.000000e+00 : f32
    %15 = vector.broadcast %cst_7 : f32 to vector<16x100xf32>
    %16 = arith.addf %15, %14 : vector<16x100xf32>
    %17 = arith.divf %15, %16 : vector<16x100xf32>
    %cst_8 = arith.constant 5.000000e-02 : f32
    %18 = vector.broadcast %cst_8 : f32 to vector<16x100xf32>
    %19 = arith.addf %17, %18 : vector<16x100xf32>
    %cst_9 = arith.constant 1.000000e+00 : f32
    %20 = vector.broadcast %cst_9 : f32 to vector<16x100xf32>
    %21 = arith.minimumf %19, %20 : vector<16x100xf32>
    %cst_10 = arith.constant 9.99999993E-9 : f32
    %22 = vector.broadcast %cst_10 : f32 to vector<16x100xf32>
    %23 = arith.maximumf %12, %22 : vector<16x100xf32>
    %24 = math.log %23 : vector<16x100xf32>
    %25 = arith.mulf %7, %24 : vector<16x100xf32>
    %cst_11 = arith.constant 1.000000e+00 : f32
    %26 = vector.broadcast %cst_11 : f32 to vector<16x100xf32>
    %27 = arith.subf %26, %7 : vector<16x100xf32>
    %cst_12 = arith.constant 9.99999993E-9 : f32
    %28 = vector.broadcast %cst_12 : f32 to vector<16x100xf32>
    %29 = arith.maximumf %21, %28 : vector<16x100xf32>
    %30 = math.log %29 : vector<16x100xf32>
    %31 = arith.mulf %27, %30 : vector<16x100xf32>
    %32 = arith.addf %25, %31 : vector<16x100xf32>
    %33 = arith.mulf %12, %7 : vector<16x100xf32>
    %cst_13 = arith.constant 1.000000e+00 : f32
    %34 = vector.broadcast %cst_13 : f32 to vector<16x100xf32>
    %35 = arith.subf %34, %7 : vector<16x100xf32>
    %36 = arith.mulf %21, %35 : vector<16x100xf32>
    %37 = arith.addf %33, %36 : vector<16x100xf32>
    %cst_14 = arith.constant 1.000000e+00 : f32
    %38 = vector.broadcast %cst_14 : f32 to vector<16x100xf32>
    %39 = arith.mulf %38, %7 : vector<16x100xf32>
    %cst_15 = arith.constant 1.000000e+00 : f32
    %40 = vector.broadcast %cst_15 : f32 to vector<16x100xf32>
    %41 = arith.subf %40, %7 : vector<16x100xf32>
    %cst_16 = arith.constant 2.000000e+00 : f32
    %42 = vector.broadcast %cst_16 : f32 to vector<16x100xf32>
    %43 = arith.mulf %42, %41 : vector<16x100xf32>
    %44 = arith.addf %39, %43 : vector<16x100xf32>
    %cst_17 = arith.constant 1.000000e+00 : f32
    %45 = vector.broadcast %cst_17 : f32 to vector<16x100xf32>
    %46 = arith.subf %45, %37 : vector<16x100xf32>
    %47 = math.powf %46, %44 : vector<16x100xf32>
    %48 = arith.mulf %32, %47 : vector<16x100xf32>
    %c0_18 = arith.constant 0 : index
    %c0_19 = arith.constant 0 : index
    %c0_20 = arith.constant 0 : index
    %49 = vector.load %arg6[%c0_18, %c0_19, %c0_20] : memref<1x16x100xf32, #tpu.memory_space<vmem>>, vector<1x16x100xf32>
    %50 = vector.shape_cast %49 : vector<1x16x100xf32> to vector<16x100xf32>
    %51 = arith.addf %50, %48 : vector<16x100xf32>
    %c0_21 = arith.constant 0 : index
    %c0_22 = arith.constant 0 : index
    %c0_23 = arith.constant 0 : index
    %52 = vector.load %arg6[%c0_21, %c0_22, %c0_23] : memref<1x16x100xf32, #tpu.memory_space<vmem>>, vector<1x16x100xf32>
    %53 = vector.shape_cast %52 : vector<1x16x100xf32> to vector<16x100xf32>
    %54 = vector.shape_cast %51 : vector<16x100xf32> to vector<1x16x100xf32>
    tpu.vector_store %arg6[%c0_21, %c0_22, %c0_23], %54 {strides = array<i32>} : memref<1x16x100xf32, #tpu.memory_space<vmem>>, vector<1x16x100xf32>,
    return
  }
  func.func @transform_0(%arg0: i32, %arg1: i32, %arg2: i32) -> (i32, i32) {
    %c1_i32 = arith.constant 1 : i32
    %0 = arith.muli %arg0, %c1_i32 : i32
    %1 = arith.addi %0, %arg1 : i32
    %c0_i32 = arith.constant 0 : i32
    return %1, %arg2 : i32, i32
  }
  func.func @transform_1(%arg0: i32, %arg1: i32, %arg2: i32) -> (i32, i32) {
    %c1_i32 = arith.constant 1 : i32
    %0 = arith.muli %arg0, %c1_i32 : i32
    %1 = arith.addi %0, %arg1 : i32
    %c0_i32 = arith.constant 0 : i32
    return %1, %arg2 : i32, i32
  }
  func.func @transform_2(%arg0: i32, %arg1: i32, %arg2: i32) -> (i32, i32) {
    %c1_i32 = arith.constant 1 : i32
    %0 = arith.muli %arg0, %c1_i32 : i32
    %1 = arith.addi %0, %arg1 : i32
    %c0_i32 = arith.constant 0 : i32
    return %1, %arg2 : i32, i32
  }
  func.func @transform_3(%arg0: i32, %arg1: i32, %arg2: i32) -> (i32, i32, i32) {
    %c0_i32 = arith.constant 0 : i32
    %c0_i32_0 = arith.constant 0 : i32
    %c0_i32_1 = arith.constant 0 : i32
    return %arg0, %c0_i32, %c0_i32_0 : i32, i32, i32
  }
}

</mosaic_0001>

<bundles_post_ra>
// kernel: tpu_custom_call.1
= control target key start
LH: loop header
LB: loop body
LE: loop exit
PB: predicated region body
PF: predicated region fallthrough
CT: control target
= control target key end

     0   :  { %8 = vsyncpa [#allocation3], 0  ;;  %s766_s0 = inlined_call_operand.hbm [shape: f32[16,100], index: 0, kind: input, shape index: {}]   ;;  %s767_s1 = inlined_call_operand.hbm [shape: f32[16,100], index: 1, kind: input, shape index: {}]   ;;  %s768_s2 = inlined_call_operand.hbm [shape: f32[16,100], index: 2, kind: input, shape index: {}]   ;;  %s769_s3 = inlined_call_operand.hbm [shape: f32[1,16,100], index: 3, kind: output, shape index: {}]  }
   0x1   :  { %9 = vsyncpa [#allocation6], 0 }
   0x2   :  { %10 = vsyncpa [#allocation4], 0  ;;  %s421_s12 = smov [#allocation5]   ;;  %s422_s14 = smov [#allocation2]  }
   0x3   :  { %s36_s13 = sshll.u32 %s421_s12, 4  ;;  %s20_s15 = sshll.u32 %s422_s14, 4  ;;  %s37_s13 = int_to_ptr.vmem [resolvable:$true] %s36_s13  ;;  %s450_s15 = int_to_ptr.vmem [resolvable:$true] %s20_s15 }
   0x4   :  { %s327_s18 = scalar_lea.hbm %s767_s1, 256 }
   0x5   :  { %p328_p0 = scmp.ne.s32.totalorder %s767_s1, %s327_s18  ;;  %p331_p1 = scmp.lt.u32.totalorder %s327_s18, %s767_s1 }
   0x7   :  { %p333_p2 = pnand %p331_p1, %p328_p0 }
   0x9   :  { %336 = shalt.err (!%p333_p2)
}
   0xa   :  { %s337_s23 = scalar_lea.vmem %s37_s13, 256  ;;  %p342_p4 = scmp.lt.s32.totalorder %s37_s13, %s37_s13 }
   0xb   :  { %p338_p3 = scmp.ne.s32.totalorder %s37_s13, %s337_s23  ;;  %p343_p5 = scmp.lt.s32.totalorder %s337_s23, %s337_s23 }
   0xd   :  { %p344_p6 = por %p343_p5, %p342_p4 }
   0xf   :  { %p345_p7 = pnand %p344_p6, %p338_p3 }
  0x11   :  { %348 = shalt.err (!%p345_p7)
}
  0x12   :  { %s423_s24 = smov 128   ;;  %s424_s25 = smov 8  }
  0x13   :  { %42 = dma.hbm_to_vmem [thread:$0]  %s767_s1, 256, %s37_s13, [#allocation6], %s423_s24, %s423_s24, %s424_s25  }
  0x14   :  { %s349_s30 = scalar_lea.hbm %s766_s0, 256 }
  0x15   :  { %p350_p8 = scmp.ne.s32.totalorder %s766_s0, %s349_s30  ;;  %p353_p9 = scmp.lt.u32.totalorder %s349_s30, %s766_s0 }
  0x17   :  { %p355_p10 = pnand %p353_p9, %p350_p8 }
  0x19   :  { %358 = shalt.err (!%p355_p10)
}
  0x1a   :  { %s359_s8 = scalar_lea.vmem %s450_s15, 256  ;;  %p364_p12 = scmp.lt.s32.totalorder %s450_s15, %s450_s15 }
  0x1b   :  { %p360_p11 = scmp.ne.s32.totalorder %s450_s15, %s359_s8  ;;  %p365_p13 = scmp.lt.s32.totalorder %s359_s8, %s359_s8 }
  0x1d   :  { %p366_p0 = por %p365_p13, %p364_p12 }
  0x1f   :  { %p367_p1 = pnand %p366_p0, %p360_p11 }
  0x21   :  { %370 = shalt.err (!%p367_p1)
}
  0x22   :  { %26 = dma.hbm_to_vmem [thread:$0]  %s766_s0, 256, %s450_s15, [#allocation3], %s423_s24, %s423_s24, %s424_s25  }
  0x23   :  { %s425_s10 = smov [#allocation7]   ;;  %s371_s14 = scalar_lea.hbm %s768_s2, 256 }
  0x24   :  { %s52_s11 = sshll.u32 %s425_s10, 4  ;;  %p372_p2 = scmp.ne.s32.totalorder %s768_s2, %s371_s14  ;;  %s53_s11 = int_to_ptr.vmem [resolvable:$true] %s52_s11 }
  0x25   :  { %p375_p3 = scmp.lt.u32.totalorder %s371_s14, %s768_s2 }
  0x27   :  { %p377_p4 = pnand %p375_p3, %p372_p2 }
  0x29   :  { %380 = shalt.err (!%p377_p4)
}
  0x2a   :  { %s381_s20 = scalar_lea.vmem %s53_s11, 256  ;;  %p386_p6 = scmp.lt.s32.totalorder %s53_s11, %s53_s11 }
  0x2b   :  { %p382_p5 = scmp.ne.s32.totalorder %s53_s11, %s381_s20  ;;  %p387_p7 = scmp.lt.s32.totalorder %s381_s20, %s381_s20 }
  0x2d   :  { %p388_p8 = por %p387_p7, %p386_p6 }
  0x2f   :  { %p389_p9 = pnand %p388_p8, %p382_p5 }
  0x31   :  { %392 = shalt.err (!%p389_p9)
}
  0x32   :  { %58 = dma.hbm_to_vmem [thread:$0]  %s768_s2, 256, %s53_s11, [#allocation6], %s423_s24, %s423_s24, %s424_s25  }
  0x33   :  { %415 = dma.done.wait [#allocation3], 256  }
  0x34   :  { %416 = vsyncadd [#allocation3], 4294967040 }
  0x35   :  { %417 = dma.done.wait [#allocation6], 512  }
  0x36   :  { %418 = vsyncadd [#allocation6], 4294966784  ;;  %vm770_vm0 = vcmask 818176   ;;  %v426_v0 = vmov 0.0   ;;  %v83_v1 = vld [vmem:[#allocation2] sm:$0xff]  ;;  %v85_v2 = vld [vmem:[#allocation5] sm:$0xff] }
  0x37   :  { %81 = vst.msk [vmem:[#allocation8] sm:$0xff] %vm770_vm0, %v426_v0  ;;  %82 = vst.msk [vmem:[#allocation8 + $0x8] sm:$0xff] %vm770_vm0, %v426_v0  ;;  %v178_v3 = vmul.f32 -1.442695, %v83_v1  ;;  %v180_v4 = vmul.f32 -1.442695, %v85_v2 }
  0x38   :  { %v84_v5 = vld [vmem:[#allocation2 + $0x8] sm:$0xff]  ;;  %v86_v6 = vld [vmem:[#allocation5 + $0x8] sm:$0xff]  ;;  %v504_v17 = vld [vmem:[#allocation7] sm:$0xff]  ;;  %v427_v2 = vmov 2139095040   ;;  %s429_s2 = smov [#allocation8]  }
  0x39   :  { %295 = vpow2.f32 %v178_v3  ;;  %v179_v7 = vmul.f32 -1.442695, %v84_v5  ;;  %v181_v8 = vmul.f32 -1.442695, %v86_v6  ;;  %v507_v18 = vsub.f32 1.0, %v504_v17  ;;  %v510_v21 = vld [vmem:[#allocation7 + $0x8] sm:$0xff] }
  0x3a   :  { %297 = vpow2.f32 %v180_v4  ;;  %v513_v25 = vsub.f32 1.0, %v510_v21  ;;  %s165_s21 = sshll.u32 %s429_s2, 4  ;;  %s166_s21 = int_to_ptr.vmem [resolvable:$true] %s165_s21 }
  0x3b   :  { %299 = vpow2.f32 %v179_v7  ;;  %v143_v20 = vmul.f32 2.0, %v507_v18  ;;  %s393_s22 = scalar_lea.vmem %s166_s21, 256  ;;  %p398_p11 = scmp.lt.s32.totalorder %s166_s21, %s166_s21 }
  0x3c   :  { %301 = vpow2.f32 %v181_v8  ;;  %v144_v35 = vmul.f32 2.0, %v513_v25  ;;  %p394_p10 = scmp.ne.s32.totalorder %s166_s21, %s393_s22  ;;  %p399_p12 = scmp.lt.s32.totalorder %s393_s22, %s393_s22 }
  0x3d   :  { %v517_v29 = vadd.f32 %v143_v20, %v504_v17 }
  0x3e   :  { %v530_v41 = vadd.f32 %v144_v35, %v510_v21  ;;  %v153_v60 = vld [vmem:[#allocation8] sm:$0xff]  ;;  %p400_p13 = por %p399_p12, %p398_p11 }
  0x3f   :  { %v521_v32 = vand.u32 2147483647, %v517_v29  ;;  %v191_v43 = vtrunc.f32 %v517_v29  ;;  %vm190_vm11 = vcmp.lt.f32.partialorder %v517_v29, 0 }
  0x40   :  { %v537_v44 = vand.u32 2147483647, %v530_v41  ;;  %v243_v53 = vtrunc.f32 %v530_v41  ;;  %v222_v3 = vsel %vm190_vm11, 0, %v427_v2  ;;  %p401_p0 = pnand %p400_p13, %p394_p10 }
  0x41   :  { %v195_v39 = vtrunc.f32 %v521_v32  ;;  %vm772_vm1 = vcmp.eq.f32.partialorder %v521_v32, 2139095040  ;;  %vm192_vm2 = vcmp.ne.f32.partialorder %v517_v29, %v191_v43  ;;  %vm194_vm8 = vcmp.lt.f32.partialorder %v521_v32, 1266679808 }
  0x42   :  { %v247_v48 = vtrunc.f32 %v537_v44  ;;  %vm550_vm3 = vmor %vm192_vm2, %vm772_vm1  ;;  %vm771_vm6 = vcmp.eq.f32.partialorder %v537_v44, 2139095040  ;;  %vm244_vm7 = vcmp.ne.f32.partialorder %v530_v41, %v243_v53  ;;  %v223_v8 = vxor.u32 2147483648, %v222_v3 }
  0x43   :  { %v296_v9 = vpop.eup %295  ;;  %v196_v45 = vcvt.f32.s32 %v195_v39  ;;  %vm199_vm5 = vmneg %vm550_vm3 }
  0x44   :  { %v298_v10 = vpop.eup %297  ;;  %v95_v11 = vadd.f32 1.0, %v296_v9  ;;  %v248_v54 = vcvt.f32.s32 %v247_v48  ;;  %vm564_vm10 = vmor %vm244_vm7, %vm771_vm6 }
  0x45   :  { %v300_v12 = vpop.eup %299  ;;  %v107_v13 = vadd.f32 1.0, %v298_v10  ;;  %v197_v50 = vand.u32 1, %v196_v45  ;;  %vm251_vm2 = vmneg %vm564_vm10 }
  0x46   :  { %v302_v14 = vpop.eup %301  ;;  %303 = vrcp.f32 %v95_v11  ;;  %v96_v15 = vadd.f32 1.0, %v300_v12  ;;  %v249_v59 = vand.u32 1, %v248_v54 }
  0x47   :  { %305 = vrcp.f32 %v107_v13  ;;  %v108_v16 = vadd.f32 1.0, %v302_v14  ;;  %vm198_vm4 = vcmp.eq.s32.totalorder %v197_v50, 1  ;;  %v428_v14 = vmov 0  }
  0x48   :  { %vm200_vm9 = vmand %vm198_vm4, %vm199_vm5  ;;  %vm250_vm15 = vcmp.eq.s32.totalorder %v249_v59, 1 }
  0x49   :  { %307 = vrcp.f32 %v108_v16  ;;  %vm570_vm13 = vmand %vm194_vm8, %vm200_vm9  ;;  %vm242_vm8 = vcmp.lt.f32.partialorder %v530_v41, 0 }
  0x4a   :  { %309 = vrcp.f32 %v96_v15  ;;  %vm596_vm9 = vmand %vm250_vm15, %vm251_vm2  ;;  %vm246_vm2 = vcmp.lt.f32.partialorder %v537_v44, 1266679808  ;;  %v274_v10 = vsel %vm242_vm8, 0, %v427_v2  ;;  %v210_v15 = vsel %vm190_vm11, 2139095040, %v428_v14  ;;  %v154_v2 = vld [vmem:[#allocation8 + $0x8] sm:$0xff] }
  0x4b   :  { %vm651_vm1 = vmand %vm246_vm2, %vm596_vm9 }
  0x50   :  { %v304_v19 = vpop.eup %303 }
  0x51   :  { %v306_v22 = vpop.eup %305  ;;  %v137_v28 = vmul.f32 %v304_v19, %v504_v17  ;;  %v117_v49 = vmax.f32 %v304_v19, 1e-08 }
  0x52   :  { %v113_v23 = vadd.f32 0.05, %v306_v22 }
  0x53   :  { %v308_v24 = vpop.eup %307 }
  0x54   :  { %v310_v26 = vpop.eup %309  ;;  %v115_v27 = vmin.f32 %v113_v23, 1.0  ;;  %v114_v30 = vadd.f32 0.05, %v308_v24  ;;  %v262_v23 = vsel %vm242_vm8, 2139095040, %v428_v14 }
  0x55   :  { %v138_v34 = vmul.f32 %v310_v26, %v510_v21  ;;  %v118_v55 = vmax.f32 %v310_v26, 1e-08 }
  0x56   :  { %v139_v31 = vmul.f32 %v507_v18, %v115_v27  ;;  %v116_v33 = vmin.f32 %v114_v30, 1.0  ;;  %v127_v51 = vmax.f32 %v115_v27, 1e-08  ;;  %v275_v30 = vxor.u32 2147483648, %v274_v10 }
  0x58   :  { %v141_v36 = vadd.f32 %v139_v31, %v137_v28  ;;  %v140_v37 = vmul.f32 %v513_v25, %v116_v33  ;;  %v128_v57 = vmax.f32 %v116_v33, 1e-08  ;;  %v224_v28 = vsel %vm570_vm13, %v223_v8, %v222_v3 }
  0x5a   :  { %v526_v38 = vsub.f32 1.0, %v141_v36  ;;  %v142_v40 = vadd.f32 %v140_v37, %v138_v34 }
  0x5c   :  { %v533_v42 = vand.u32 2147483647, %v526_v38  ;;  %v540_v46 = vsub.f32 1.0, %v142_v40  ;;  %vm773_vm12 = vcmp.eq.f32.partialorder %v526_v38, 0  ;;  %vm774_vm4 = vcmp.lt.f32.partialorder %v526_v38, 0 }
  0x5d   :  { %vm582_vm5 = vmand %vm190_vm11, %vm773_vm12  ;;  %vm205_vm12 = vcmp.lt.s32.totalorder %v526_v38, 0  ;;  %vm798_vm9 = vcmp.eq.f32.partialorder %v526_v38, 0 }
  0x5e   :  { %311 = vlog2.f32 %v533_v42  ;;  %v545_v47 = vand.u32 2147483647, %v540_v46  ;;  %vm206_vm14 = vcmp.gt.f32.partialorder %v533_v42, 1065353216  ;;  %vm775_vm0 = vcmp.eq.f32.partialorder %v540_v46, 0 }
  0x5f   :  { %vm589_vm7 = vmxor %vm190_vm11, %vm206_vm14  ;;  %vm219_vm11 = vcmp.eq.f32.partialorder %v526_v38, 3212836864  ;;  %vm257_vm2 = vcmp.lt.s32.totalorder %v540_v46, 0 }
  0x60   :  { %313 = vlog2.f32 %v545_v47  ;;  %vm605_vm14 = vmand %vm774_vm4, %vm550_vm3  ;;  %vm258_vm6 = vcmp.gt.f32.partialorder %v545_v47, 1065353216  ;;  %vm240_vm4 = vcmp.eq.f32.partialorder %v530_v41, 0 }
  0x61   :  { %315 = vlog2.f32 %v117_v49  ;;  %vm217_vm15 = vmor %vm582_vm5, %vm589_vm7  ;;  %vm280_vm7 = vcmp.ne.f32.partialorder %v530_v41, %v530_v41  ;;  %v276_v49 = vsel %vm651_vm1, %v275_v30, %v274_v10 }
  0x62   :  { %317 = vlog2.f32 %v127_v51  ;;  %vm621_vm3 = vmand %vm242_vm8, %vm775_vm0  ;;  %v218_v20 = vsel %vm217_vm15, 2139095040, %v428_v14  ;;  %vm207_vm15 = vcmp.eq.f32.partialorder %v533_v42, 2139095040 }
  0x63   :  { %319 = vlog2.f32 %v118_v55  ;;  %vm636_vm0 = vmxor %vm242_vm8, %vm258_vm6  ;;  %vm254_vm6 = vcmp.lt.f32.partialorder %v540_v46, 0  ;;  %vm204_vm8 = vcmp.eq.f32.partialorder %v526_v38, 1065353216  ;;  %v220_v37 = vsel %vm219_vm11, 1065353216, %v218_v20 }
  0x64   :  { %vm664_vm5 = vmand %vm205_vm12, %vm570_vm13 }
  0x65   :  { %vm269_vm12 = vmor %vm621_vm3, %vm636_vm0  ;;  %vm801_vm0 = vcmp.lt.f32.partialorder %v526_v38, 0  ;;  %vm802_vm3 = vcmp.ne.f32.partialorder %v517_v29, %v517_v29 }
  0x66   :  { %vm689_vm13 = vmand %vm254_vm6, %vm564_vm10  ;;  %v225_v40 = vsel %vm801_vm0, %v224_v28, %v222_v3  ;;  %v270_v48 = vsel %vm269_vm12, 2139095040, %v428_v14  ;;  %vm271_vm10 = vcmp.eq.f32.partialorder %v540_v46, 3212836864  ;;  %vm806_vm0 = vcmp.eq.f32.partialorder %v517_v29, 0 }
  0x67   :  { %vm807_vm12 = vcmp.eq.f32.partialorder %v540_v46, 0 }
  0x68   :  { %v312_v56 = vpop.eup %311 }
  0x69   :  { %v184_v58 = vmul.f32 %v312_v56, %v517_v29 }
  0x6a   :  { %v314_v62 = vpop.eup %313 }
  0x6b   :  { %321 = vpow2.f32 %v184_v58  ;;  %v236_v0 = vmul.f32 %v314_v62, %v530_v41  ;;  %v316_v4 = vpop.eup %315  ;;  %v277_v58 = vsel %vm254_vm6, %v276_v49, %v274_v10  ;;  %vm241_vm6 = vcmp.eq.f32.partialorder %v530_v41, 1065353216 }
  0x6c   :  { %323 = vlog2.f32 %v128_v57  ;;  %v318_v6 = vpop.eup %317  ;;  %v120_v12 = vmul.f32 0.6931472, %v316_v4  ;;  %v272_v57 = vsel %vm271_vm10, 1065353216, %v270_v48  ;;  %vm810_vm10 = vcmask 818176  }
  0x6d   :  { %325 = vpow2.f32 %v236_v0  ;;  %v320_v11 = vpop.eup %319  ;;  %v130_v13 = vmul.f32 0.6931472, %v318_v6 }
  0x6e   :  { %v122_v33 = vmul.f32 0.6931472, %v320_v11  ;;  %v123_v34 = vmul.f32 %v120_v12, %v504_v17 }
  0x6f   :  { %v133_v35 = vmul.f32 %v130_v13, %v507_v18 }
  0x70   :  { %v124_v51 = vmul.f32 %v122_v33, %v510_v21 }
  0x71   :  { %v135_v53 = vadd.f32 %v133_v35, %v123_v34 }
  0x75   :  { %v322_v19 = vpop.eup %321 }
  0x76   :  { %v324_v24 = vpop.eup %323  ;;  %v209_v26 = vsel %vm605_vm14, 2143289344, %v322_v19  ;;  %vm227_vm14 = vcmp.ne.f32.partialorder %v526_v38, %v526_v38 }
  0x77   :  { %v211_v31 = vsel %vm798_vm9, %v210_v15, %v209_v26  ;;  %v132_v17 = vmul.f32 0.6931472, %v324_v24  ;;  %v326_v18 = vpop.eup %325  ;;  %vm702_vm11 = vmor %vm227_vm14, %vm802_vm3  ;;  %vm805_vm9 = vcmp.eq.f32.partialorder %v521_v32, 2139095040  ;;  %vm256_vm14 = vcmp.eq.f32.partialorder %v540_v46, 1065353216 }
  0x78   :  { %v213_v36 = vxor.u32 2147483648, %v211_v31  ;;  %v261_v52 = vsel %vm689_vm13, 2143289344, %v326_v18  ;;  %vm264_vm3 = vmand %vm257_vm2, %vm651_vm1  ;;  %vm259_vm13 = vcmp.eq.f32.partialorder %v545_v47, 2139095040  ;;  %vm809_vm2 = vcmp.eq.f32.partialorder %v537_v44, 2139095040 }
  0x79   :  { %v263_v32 = vsel %vm807_vm12, %v262_v23, %v261_v52  ;;  %v134_v55 = vmul.f32 %v132_v17, %v513_v25 }
  0x7a   :  { %v214_v43 = vsel %vm664_vm5, %v213_v36, %v211_v31  ;;  %vm231_vm5 = vmor %vm204_vm8, %vm806_vm0  ;;  %vm279_vm8 = vcmp.ne.f32.partialorder %v540_v46, %v540_v46  ;;  %v265_v56 = vxor.u32 2147483648, %v263_v32 }
  0x7b   :  { %v221_v50 = vsel %vm805_vm9, %v220_v37, %v214_v43  ;;  %vm281_vm1 = vmor %vm279_vm8, %vm280_vm7  ;;  %v136_v47 = vadd.f32 %v134_v55, %v124_v51 }
  0x7c   :  { %v226_v54 = vsel %vm207_vm15, %v225_v40, %v221_v50  ;;  %vm808_vm15 = vcmp.eq.f32.partialorder %v517_v29, 1065353216  ;;  %v266_v61 = vsel %vm264_vm3, %v265_v56, %v263_v32  ;;  %vm811_vm7 = vmmov %vm810_vm10 }
  0x7d   :  { %v230_v21 = vsel %vm702_vm11, 2143289344, %v226_v54  ;;  %v273_v25 = vsel %vm809_vm2, %v272_v57, %v266_v61  ;;  %vm283_vm11 = vmor %vm256_vm14, %vm240_vm4 }
  0x7e   :  { %v232_v42 = vsel %vm231_vm5, 1065353216, %v230_v21  ;;  %v278_v29 = vsel %vm259_vm13, %v277_v58, %v273_v25 }
  0x7f   :  { %v233_v59 = vsel %vm808_vm15, %v526_v38, %v232_v42  ;;  %v282_v63 = vsel %vm281_vm1, 2143289344, %v278_v29 }
  0x80   :  { %v151_v62 = vmul.f32 %v233_v59, %v135_v53  ;;  %v284_v0 = vsel %vm283_vm11, 1065353216, %v282_v63 }
  0x81   :  { %v285_v1 = vsel %vm241_vm6, %v540_v46, %v284_v0 }
  0x82   :  { %v155_v38 = vadd.f32 %v153_v60, %v151_v62  ;;  %v152_v44 = vmul.f32 %v285_v1, %v136_v47 }
  0x84   :  { %158 = vst.msk [vmem:[#allocation8] sm:$0xff] %vm810_vm10, %v155_v38  ;;  %v156_v3 = vadd.f32 %v154_v2, %v152_v44 }
  0x86   :  { %159 = vst.msk [vmem:[#allocation8 + $0x8] sm:$0xff] %vm811_vm7, %v156_v3 }
  0x87   :  { %404 = shalt.err (!%p401_p0)
}
  0x88   :  { %s405_s27 = scalar_lea.hbm %s769_s3, 256 }
  0x89   :  { %p406_p1 = scmp.ne.s32.totalorder %s769_s3, %s405_s27  ;;  %p409_p2 = scmp.lt.u32.totalorder %s405_s27, %s769_s3 }
  0x8b   :  { %p411_p3 = pnand %p409_p2, %p406_p1 }
  0x8d   :  { %414 = shalt.err (!%p411_p3)
}
  0x8e   :  { %171 = dma.vmem_to_hbm [thread:$0]  %s166_s21, 256, %s769_s3, [#allocation4], %s423_s24, %s423_s24, %s424_s25  }
  0x8f   :  { %419 = dma.done.wait [#allocation4], 256  }
  0x90   :  { %420 = vsyncadd [#allocation4], 4294967040 }
  0x91   :  { %175 = vsyncpa [#allocation3], 1 }
  0x92   :  { %176 = vsyncpa [#allocation6], 1 }
  0x93   :  { %177 = vsyncpa [#allocation4], 1 }

</bundles_post_ra>
